<compile_context>
chip_gen: v7x
topology: tpu7x:2x2x1
jax: 0.10.0
libtpu: 0.0.40
codegen_flags: <defaults>
</compile_context>

<pallas_src>
import jax
import jax.numpy as jnp
from jax.experimental import pallas as pl
from jax.experimental.pallas import tpu as pltpu


def _round_up(x, m):
    return ((x + m - 1) // m) * m


def _attention_kernel(src_ref, tgt_ref, w_src_ref, w_tgt_ref, b_ref,
                      out_ref, *gate_ref):
    src = src_ref[...]                               # [TN, Ds] (input dtype)
    tgt = tgt_ref[...]                               # [TN, Dt]

    # relu(concat([src, tgt], 1)) @ W  ==  relu(src) @ W_src + relu(tgt) @ W_tgt
    src_r = jnp.maximum(src, 0).astype(jnp.bfloat16)
    tgt_r = jnp.maximum(tgt, 0).astype(jnp.bfloat16)

    logits = (
        jnp.dot(src_r, w_src_ref[...], preferred_element_type=jnp.float32)
        + jnp.dot(tgt_r, w_tgt_ref[...], preferred_element_type=jnp.float32)
        + b_ref[...]                                 # [1, F] broadcast over rows
    )                                                # [TN, F] f32

    gate = jnp.mean(jax.nn.sigmoid(logits), axis=1, keepdims=True)   # [TN, 1] f32

    out_ref[...] = (src.astype(jnp.float32) * gate).astype(out_ref.dtype)
    if gate_ref:                                     # only in return_gate_value path
        gate_ref[0][...] = gate.astype(gate_ref[0].dtype)


def attention_module_forward(source_feat, target_feat, weight, bias,
                             return_gate_value=False, block_n=1024):
    """source_feat: [N, Ds], target_feat: [N, Dt],
    weight: [F, Ds+Dt] (PyTorch nn.Linear layout), bias: [F]."""
    n, ds = source_feat.shape
    _, dt = target_feat.shape
    f = weight.shape[0]

    # Transpose to [D_in, F], split into source / target halves (fuses the
    # concat away), and store in bf16 for the MXU.
    w_t = weight.T.astype(jnp.bfloat16)              # [Ds+Dt, F]
    w_src = w_t[:ds]                                 # [Ds, F]
    w_tgt = w_t[ds:]                                 # [Dt, F]
    b2 = bias.reshape(1, f).astype(jnp.float32)      # [1, F]

    # Batch tile: multiple of 8 sublanes, capped so small inputs stay one block.
    tn = min(block_n, _round_up(n, 8))
    grid = (pl.cdiv(n, tn),)

    in_specs = [
        pl.BlockSpec((tn, ds), lambda i: (i, 0)),    # source tile (pipelined)
        pl.BlockSpec((tn, dt), lambda i: (i, 0)),    # target tile (pipelined)
        pl.BlockSpec((ds, f), lambda i: (0, 0)),     # weights stay resident
        pl.BlockSpec((dt, f), lambda i: (0, 0)),
        pl.BlockSpec((1, f), lambda i: (0, 0)),      # bias stays resident
    ]
    out_shape = [jax.ShapeDtypeStruct((n, ds), source_feat.dtype)]
    out_specs = [pl.BlockSpec((tn, ds), lambda i: (i, 0))]
    if return_gate_value:
        out_shape.append(jax.ShapeDtypeStruct((n, 1), jnp.float32))
        out_specs.append(pl.BlockSpec((tn, 1), lambda i: (i, 0)))

    results = pl.pallas_call(
        _attention_kernel,
        out_shape=tuple(out_shape),
        grid=grid,
        in_specs=in_specs,
        out_specs=tuple(out_specs),
        compiler_params=pltpu.CompilerParams(
            dimension_semantics=("parallel",)),
    )(source_feat, target_feat, w_src, w_tgt, b2)

    if return_gate_value:
        return results
    return results[0]


def _reference(source_feat, target_feat, weight, bias):
    gate_in = jnp.maximum(jnp.concatenate([source_feat, target_feat], axis=1), 0.0)
    logits = gate_in @ weight.T + bias
    gate = jnp.mean(jax.nn.sigmoid(logits), axis=1, keepdims=True)
    return source_feat * gate, gate


if __name__ == "__main__":
    DS, DT, FS = 32, 32, 128
    key = jax.random.PRNGKey(0)
    k1, k2, k3, k4 = jax.random.split(key, 4)

    # Deterministic nn.Linear-style init (uniform in +/- 1/sqrt(fan_in)).
    fan_in = DS + DT
    bound = 1.0 / (fan_in ** 0.5)
    weight = jax.random.uniform(k3, (FS, DS + DT), minval=-bound, maxval=bound,
                                dtype=jnp.float32)
    bias = jax.random.uniform(k4, (FS,), minval=-bound, maxval=bound,
                              dtype=jnp.float32)

    # --- Small shape, single block, both output variants -------------------
    N = 8
    source_feat = jax.random.normal(k1, (N, DS), dtype=jnp.float32)
    target_feat = jax.random.normal(k2, (N, DT), dtype=jnp.float32)

    out, gate = attention_module_forward(source_feat, target_feat, weight, bias,
                                         return_gate_value=True)
    out = jax.block_until_ready(out)
    gate = jax.block_until_ready(gate)

    ref_out, ref_gate = _reference(source_feat, target_feat, weight, bias)
    assert jnp.allclose(out, ref_out, atol=1e-2, rtol=1e-2), "output mismatch"
    assert jnp.allclose(gate, ref_gate, atol=1e-2, rtol=1e-2), "gate mismatch"

    out_only = attention_module_forward(source_feat, target_feat, weight, bias,
                                        return_gate_value=False)
    out_only = jax.block_until_ready(out_only)
    assert jnp.allclose(out_only, ref_out, atol=1e-2, rtol=1e-2), \
        "output-only mismatch"

    # --- Multi-block grid with a partial final tile -------------------------
    N2 = 200
    k5, k6 = jax.random.split(k1)
    src2 = jax.random.normal(k5, (N2, DS), dtype=jnp.float32)
    tgt2 = jax.random.normal(k6, (N2, DT), dtype=jnp.float32)
    out2 = attention_module_forward(src2, tgt2, weight, bias,
                                    return_gate_value=False, block_n=64)
    out2 = jax.block_until_ready(out2)
    ref_out2, _ = _reference(src2, tgt2, weight, bias)
    assert jnp.allclose(out2, ref_out2, atol=1e-2, rtol=1e-2), \
        "tiled output mismatch"

    print("KERNEL_OK")
</pallas_src>

<mosaic_0001>
module attributes {stable_mosaic.version = 11 : i64} {
  func.func @_attention_kernel(%arg0: i32, %arg1: memref<8x32xf32, #tpu.memory_space<vmem>>, %arg2: memref<8x32xf32, #tpu.memory_space<vmem>>, %arg3: memref<32x128xbf16, #tpu.memory_space<vmem>>, %arg4: memref<32x128xbf16, #tpu.memory_space<vmem>>, %arg5: memref<1x128xf32, #tpu.memory_space<vmem>>, %arg6: memref<8x32xf32, #tpu.memory_space<vmem>>, %arg7: memref<8x1xf32, #tpu.memory_space<vmem>>) attributes {dimension_semantics = [#tpu.dimension_semantics<parallel>], iteration_bounds = array<i64: 1>, scalar_prefetch = 0 : i64, scratch_operands = 0 : i64, tpu.core_type = #tpu.core_type<tc>, window_params = [{transform_indices = @transform_0, window_bounds = array<i64: 8, 32>}, {transform_indices = @transform_1, window_bounds = array<i64: 8, 32>}, {pipeline_mode = #tpu.pipeline_mode<synchronous>, transform_indices = @transform_2, window_bounds = array<i64: 32, 128>}, {pipeline_mode = #tpu.pipeline_mode<synchronous>, transform_indices = @transform_3, window_bounds = array<i64: 32, 128>}, {pipeline_mode = #tpu.pipeline_mode<synchronous>, transform_indices = @transform_4, window_bounds = array<i64: 1, 128>}, {transform_indices = @transform_5, window_bounds = array<i64: 8, 32>}, {transform_indices = @transform_6, window_bounds = array<i64: 8, 1>}]} {
    %c0 = arith.constant 0 : index
    %c0_0 = arith.constant 0 : index
    %0 = vector.load %arg1[%c0, %c0_0] : memref<8x32xf32, #tpu.memory_space<vmem>>, vector<8x32xf32>
    %c0_1 = arith.constant 0 : index
    %c0_2 = arith.constant 0 : index
    %1 = vector.load %arg2[%c0_1, %c0_2] : memref<8x32xf32, #tpu.memory_space<vmem>>, vector<8x32xf32>
    %cst = arith.constant 0.000000e+00 : f32
    %2 = vector.broadcast %cst : f32 to vector<8x32xf32>
    %3 = arith.maximumf %0, %2 : vector<8x32xf32>
    %4 = arith.truncf %3 : vector<8x32xf32> to vector<8x32xbf16>
    %cst_3 = arith.constant 0.000000e+00 : f32
    %5 = vector.broadcast %cst_3 : f32 to vector<8x32xf32>
    %6 = arith.maximumf %1, %5 : vector<8x32xf32>
    %7 = arith.truncf %6 : vector<8x32xf32> to vector<8x32xbf16>
    %c0_4 = arith.constant 0 : index
    %c0_5 = arith.constant 0 : index
    %8 = vector.load %arg3[%c0_4, %c0_5] : memref<32x128xbf16, #tpu.memory_space<vmem>>, vector<32x128xbf16>
    %cst_6 = arith.constant dense<0.000000e+00> : vector<8x128xf32>
    %9 = tpu.matmul %4, %8, %cst_6 {dimension_numbers = #tpu.dot_dimension_numbers<[1], [0], [0], [1], [0, 0, 1, 1], [], []>} : vector<8x32xbf16>, vector<32x128xbf16>, vector<8x128xf32> -> vector<8x128xf32>
    %c0_7 = arith.constant 0 : index
    %c0_8 = arith.constant 0 : index
    %10 = vector.load %arg4[%c0_7, %c0_8] : memref<32x128xbf16, #tpu.memory_space<vmem>>, vector<32x128xbf16>
    %cst_9 = arith.constant dense<0.000000e+00> : vector<8x128xf32>
    %11 = tpu.matmul %7, %10, %cst_9 {dimension_numbers = #tpu.dot_dimension_numbers<[1], [0], [0], [1], [0, 0, 1, 1], [], []>} : vector<8x32xbf16>, vector<32x128xbf16>, vector<8x128xf32> -> vector<8x128xf32>
    %12 = arith.addf %9, %11 : vector<8x128xf32>
    %c0_10 = arith.constant 0 : index
    %c0_11 = arith.constant 0 : index
    %13 = vector.load %arg5[%c0_10, %c0_11] : memref<1x128xf32, #tpu.memory_space<vmem>>, vector<1x128xf32>
    %14 = vector.broadcast %13 : vector<1x128xf32> to vector<8x128xf32>
    %15 = arith.addf %12, %14 : vector<8x128xf32>
    %16 = arith.negf %15 : vector<8x128xf32>
    %17 = math.exp %16 : vector<8x128xf32>
    %cst_12 = arith.constant 1.000000e+00 : f32
    %18 = vector.broadcast %cst_12 : f32 to vector<8x128xf32>
    %19 = arith.addf %18, %17 : vector<8x128xf32>
    %20 = arith.divf %18, %19 : vector<8x128xf32>
    %cst_13 = arith.constant dense<0.000000e+00> : vector<8xf32>
    %21 = vector.multi_reduction <add>, %20, %cst_13 [1] : vector<8x128xf32> to vector<8xf32>
    %22 = vector.shape_cast %21 : vector<8xf32> to vector<8x1xf32>
    %cst_14 = arith.constant 1.280000e+02 : f32
    %23 = vector.broadcast %cst_14 : f32 to vector<8x1xf32>
    %24 = arith.divf %22, %23 : vector<8x1xf32>
    %25 = vector.broadcast %24 : vector<8x1xf32> to vector<8x32xf32>
    %26 = arith.mulf %0, %25 : vector<8x32xf32>
    %c0_15 = arith.constant 0 : index
    %c0_16 = arith.constant 0 : index
    %27 = vector.load %arg6[%c0_15, %c0_16] : memref<8x32xf32, #tpu.memory_space<vmem>>, vector<8x32xf32>
    tpu.vector_store %arg6[%c0_15, %c0_16], %26 {strides = array<i32>} : memref<8x32xf32, #tpu.memory_space<vmem>>, vector<8x32xf32>,
    %c0_17 = arith.constant 0 : index
    %c0_18 = arith.constant 0 : index
    %28 = vector.load %arg7[%c0_17, %c0_18] : memref<8x1xf32, #tpu.memory_space<vmem>>, vector<8x1xf32>
    tpu.vector_store %arg7[%c0_17, %c0_18], %24 {strides = array<i32>} : memref<8x1xf32, #tpu.memory_space<vmem>>, vector<8x1xf32>,
    return
  }
  func.func @transform_0(%arg0: i32) -> (i32, i32) {
    %c0_i32 = arith.constant 0 : i32
    %c0_i32_0 = arith.constant 0 : i32
    return %arg0, %c0_i32 : i32, i32
  }
  func.func @transform_1(%arg0: i32) -> (i32, i32) {
    %c0_i32 = arith.constant 0 : i32
    %c0_i32_0 = arith.constant 0 : i32
    return %arg0, %c0_i32 : i32, i32
  }
  func.func @transform_2(%arg0: i32) -> (i32, i32) {
    %c0_i32 = arith.constant 0 : i32
    %c0_i32_0 = arith.constant 0 : i32
    %c0_i32_1 = arith.constant 0 : i32
    return %c0_i32, %c0_i32_0 : i32, i32
  }
  func.func @transform_3(%arg0: i32) -> (i32, i32) {
    %c0_i32 = arith.constant 0 : i32
    %c0_i32_0 = arith.constant 0 : i32
    %c0_i32_1 = arith.constant 0 : i32
    return %c0_i32, %c0_i32_0 : i32, i32
  }
  func.func @transform_4(%arg0: i32) -> (i32, i32) {
    %c0_i32 = arith.constant 0 : i32
    %c0_i32_0 = arith.constant 0 : i32
    %c0_i32_1 = arith.constant 0 : i32
    return %c0_i32, %c0_i32_0 : i32, i32
  }
  func.func @transform_5(%arg0: i32) -> (i32, i32) {
    %c0_i32 = arith.constant 0 : i32
    %c0_i32_0 = arith.constant 0 : i32
    return %arg0, %c0_i32 : i32, i32
  }
  func.func @transform_6(%arg0: i32) -> (i32, i32) {
    %c0_i32 = arith.constant 0 : i32
    %c0_i32_0 = arith.constant 0 : i32
    return %arg0, %c0_i32 : i32, i32
  }
}

</mosaic_0001>

<bundles_post_ra>
// kernel: tpu_custom_call.1
= control target key start
LH: loop header
LB: loop body
LE: loop exit
PB: predicated region body
PF: predicated region fallthrough
CT: control target
= control target key end

     0   :  { %12 = vsyncpa [#allocation3], 0  ;;  %s521_s0 = inlined_call_operand.hbm [shape: f32[8,32], index: 0, kind: input, shape index: {}]   ;;  %s522_s1 = inlined_call_operand.hbm [shape: f32[8,32], index: 1, kind: input, shape index: {}]   ;;  %s523_s2 = inlined_call_operand.hbm [shape: bf16[32,128], index: 2, kind: input, shape index: {}]   ;;  %s524_s3 = inlined_call_operand.hbm [shape: bf16[32,128], index: 3, kind: input, shape index: {}]   ;;  %s525_s4 = inlined_call_operand.vmem [shape: f32[1,128], index: 4, kind: input, shape index: {}]   ;;  %s526_s5 = inlined_call_operand.hbm [shape: f32[8,32], index: 5, kind: output, shape index: {0}]   ;;  %s527_s6 = inlined_call_operand.vmem [shape: f32[8,1], index: 6, kind: output, shape index: {1}]  }
   0x1   :  { %13 = vsyncpa [#allocation6], 0 }
   0x2   :  { %14 = vsyncpa [#allocation9], 0 }
   0x3   :  { %15 = vsyncpa [#allocation4], 0  ;;  %s408_s21 = smov [#allocation5]   ;;  %s409_s23 = smov [#allocation2]  }
   0x4   :  { %s32_s22 = sshll.u32 %s408_s21, 4  ;;  %s22_s24 = sshll.u32 %s409_s23, 4  ;;  %s33_s22 = int_to_ptr.vmem [resolvable:$true] %s32_s22  ;;  %s23_s24 = int_to_ptr.vmem [resolvable:$true] %s22_s24 }
   0x5   :  { %s290_s27 = scalar_lea.hbm %s522_s1, 128 }
   0x6   :  { %p291_p0 = scmp.ne.s32.totalorder %s522_s1, %s290_s27  ;;  %p294_p1 = scmp.lt.u32.totalorder %s290_s27, %s522_s1 }
   0x8   :  { %p296_p2 = pnand %p294_p1, %p291_p0 }
   0xa   :  { %299 = shalt.err (!%p296_p2)
}
   0xb   :  { %s300_s8 = scalar_lea.vmem %s33_s22, 128  ;;  %p305_p4 = scmp.lt.s32.totalorder %s33_s22, %s33_s22 }
   0xc   :  { %p301_p3 = scmp.ne.s32.totalorder %s33_s22, %s300_s8  ;;  %p306_p5 = scmp.lt.s32.totalorder %s300_s8, %s300_s8 }
   0xe   :  { %p307_p6 = por %p306_p5, %p305_p4 }
  0x10   :  { %p308_p7 = pnand %p307_p6, %p301_p3 }
  0x12   :  { %311 = shalt.err (!%p308_p7)
}
  0x13   :  { %35 = dma.hbm_to_vmem [thread:$0]  %s522_s1, 128, %s33_s22, [#allocation6]  }
  0x14   :  { %s312_s13 = scalar_lea.hbm %s521_s0, 128 }
  0x15   :  { %p313_p8 = scmp.ne.s32.totalorder %s521_s0, %s312_s13  ;;  %p316_p9 = scmp.lt.u32.totalorder %s312_s13, %s521_s0 }
  0x17   :  { %p318_p10 = pnand %p316_p9, %p313_p8 }
  0x19   :  { %321 = shalt.err (!%p318_p10)
}
  0x1a   :  { %s322_s18 = scalar_lea.vmem %s23_s24, 128  ;;  %p327_p12 = scmp.lt.s32.totalorder %s23_s24, %s23_s24 }
  0x1b   :  { %p323_p11 = scmp.ne.s32.totalorder %s23_s24, %s322_s18  ;;  %p328_p13 = scmp.lt.s32.totalorder %s322_s18, %s322_s18 }
  0x1d   :  { %p329_p0 = por %p328_p13, %p327_p12 }
  0x1f   :  { %p330_p1 = pnand %p329_p0, %p323_p11 }
  0x21   :  { %333 = shalt.err (!%p330_p1)
}
  0x22   :  { %25 = dma.hbm_to_vmem [thread:$0]  %s521_s0, 128, %s23_s24, [#allocation3]  }
  0x23   :  { %s410_s20 = smov [#allocation7]   ;;  %s334_s25 = scalar_lea.hbm %s523_s2, 256 }
  0x24   :  { %s41_s21 = sshll.u32 %s410_s20, 4  ;;  %p335_p2 = scmp.ne.s32.totalorder %s523_s2, %s334_s25  ;;  %s42_s21 = int_to_ptr.vmem [resolvable:$true] %s41_s21 }
  0x25   :  { %p338_p3 = scmp.lt.u32.totalorder %s334_s25, %s523_s2 }
  0x27   :  { %p340_p4 = pnand %p338_p3, %p335_p2 }
  0x29   :  { %343 = shalt.err (!%p340_p4)
}
  0x2a   :  { %s344_s30 = scalar_lea.vmem %s42_s21, 256  ;;  %p349_p6 = scmp.lt.s32.totalorder %s42_s21, %s42_s21 }
  0x2b   :  { %p345_p5 = scmp.ne.s32.totalorder %s42_s21, %s344_s30  ;;  %p350_p7 = scmp.lt.s32.totalorder %s344_s30, %s344_s30 }
  0x2d   :  { %p351_p8 = por %p350_p7, %p349_p6 }
  0x2f   :  { %p352_p9 = pnand %p351_p8, %p345_p5 }
  0x31   :  { %355 = shalt.err (!%p352_p9)
}
  0x32   :  { %s411_s0 = smov 64   ;;  %s412_s24 = smov 4  }
  0x33   :  { %47 = dma.hbm_to_vmem [thread:$0]  %s523_s2, 256, %s42_s21, [#allocation6], %s411_s0, %s411_s0, %s412_s24  }
  0x34   :  { %s413_s9 = smov [#allocation8]   ;;  %s356_s13 = scalar_lea.hbm %s524_s3, 256 }
  0x35   :  { %s53_s10 = sshll.u32 %s413_s9, 4  ;;  %p357_p10 = scmp.ne.s32.totalorder %s524_s3, %s356_s13  ;;  %s54_s10 = int_to_ptr.vmem [resolvable:$true] %s53_s10 }
  0x36   :  { %p360_p11 = scmp.lt.u32.totalorder %s356_s13, %s524_s3 }
  0x38   :  { %p362_p12 = pnand %p360_p11, %p357_p10 }
  0x3a   :  { %365 = shalt.err (!%p362_p12)
}
  0x3b   :  { %s366_s18 = scalar_lea.vmem %s54_s10, 256  ;;  %p371_p0 = scmp.lt.s32.totalorder %s54_s10, %s54_s10 }
  0x3c   :  { %p367_p13 = scmp.ne.s32.totalorder %s54_s10, %s366_s18  ;;  %p372_p1 = scmp.lt.s32.totalorder %s366_s18, %s366_s18 }
  0x3e   :  { %p373_p2 = por %p372_p1, %p371_p0 }
  0x40   :  { %p374_p3 = pnand %p373_p2, %p367_p13 }
  0x42   :  { %377 = shalt.err (!%p374_p3)
}
  0x43   :  { %59 = dma.hbm_to_vmem [thread:$0]  %s524_s3, 256, %s54_s10, [#allocation9], %s411_s0, %s411_s0, %s412_s24  }
  0x44   :  { %400 = dma.done.wait [#allocation3], 128  }
  0x45   :  { %401 = vsyncadd [#allocation3], 4294967168 }
  0x46   :  { %402 = dma.done.wait [#allocation6], 384  }
  0x47   :  { %403 = vsyncadd [#allocation6], 4294966912 }
  0x48   :  { %404 = dma.done.wait [#allocation9], 256  }
  0x49   :  { %405 = vsyncadd [#allocation9], 4294967040  ;;  %v414_v0 = vmov 0.0   ;;  %vm415_vm0 = vmmov 0   ;;  %v282_v1 = vld [vmem:[#allocation8] sm:$0xff]   ;;  %v283_v2 = vld [vmem:[#allocation7] sm:$0xff]  }
  0x4a   :  { %257 = vmatprep.subr.bf16.mxu0 %v414_v0  ;;  %265 = vmatprep.subr.bf16.mxu1 %v414_v0  ;;  %v284_v3 = vld [vmem:[#allocation8 + $0x8] sm:$0xff]   ;;  %v285_v4 = vld [vmem:[#allocation7 + $0x8] sm:$0xff]   ;;  %v75_v6 = vld [vmem:[#allocation2] sm:$0xff]  ;;  %vm101_vm1 = vcmask 261120   ;;  %vm220_vm2 = vcmask 7168   ;;  %s416_s20 = smov [#allocation10]  }
  0x4b   :  { %261 = vmatprep.mubr.msk.bf16.mxu0 %vm415_vm0, %v414_v0  ;;  %269 = vmatprep.mubr.msk.bf16.mxu1 %vm415_vm0, %v414_v0  ;;  %v76_v5 = vld [vmem:[#allocation5] sm:$0xff]  ;;  %v77_v8 = vmax.f32 %v75_v6, 0.0  ;;  %v249_v13 = vld [vmem:[%s525_s4] ss:$0 sm:$0xff]  ;;  %s228_s21 = sshll.u32 %s416_s20, 4  ;;  %s229_s21 = int_to_ptr.vmem [resolvable:$true] %s228_s21 }
  0x4c   :  { %258 = vmatpush3.bf16.msra.mxu0 %v282_v1  ;;  %266 = vmatpush3.bf16.msra.mxu1 %v283_v2  ;;  %v79_v7 = vmax.f32 %v76_v5, 0.0  ;;  %s378_s23 = scalar_lea.vmem %s229_s21, 128  ;;  %p383_p5 = scmp.lt.s32.totalorder %s229_s21, %s229_s21 }
  0x4d   :  { %259 = vmatprep.subr.bf16.mxu0 %v414_v0  ;;  %267 = vmatprep.subr.bf16.mxu1 %v414_v0  ;;  %v78_v10 = vpack.c.bf16 %v77_v8, %v77_v8  ;;  %p379_p4 = scmp.ne.s32.totalorder %s229_s21, %s378_s23  ;;  %p384_p6 = scmp.lt.s32.totalorder %s378_s23, %s378_s23 }
  0x4e   :  { %v80_v9 = vpack.c.bf16 %v79_v7, %v79_v7 }
  0x4f   :  { %p385_p7 = por %p384_p6, %p383_p5 }
  0x50   :  { %260 = vmatpush3.bf16.msra.mxu0 %v284_v3  ;;  %268 = vmatpush3.bf16.msra.mxu1 %v285_v4 }
  0x51   :  { %p386_p8 = pnand %p385_p7, %p379_p4 }
  0x53   :  { %262 = vmatmul.mubr.msk.bf16.vlgmr.msra.gmra.mrb[0].mxu0 %vm101_vm1, %v80_v9  ;;  %270 = vmatmul.mubr.msk.bf16.vlgmr.msra.gmra.mrb[0].mxu1 %vm101_vm1, %v78_v10 }
 0x126   :  { %v139_v11 = vpop.f32.mrb[0].mxu0  ;;  %v194_v12 = vpop.f32.mrb[0].mxu1 }
 0x127   :  { %v263_v14 = vpop.f32.mrb[1].mxu0  ;;  %v195_v15 = vadd.f32 %v194_v12, %v139_v11  ;;  %v271_v16 = vpop.f32.mrb[1].mxu1 }
 0x128   :  { %v142_v17 = vpop.f32.mrb[2].mxu0  ;;  %v197_v18 = vpop.f32.mrb[2].mxu1 }
 0x129   :  { %v264_v19 = vpop.f32.mrb[3].mxu0  ;;  %v207_v20 = vadd.f32 %v249_v13, %v195_v15  ;;  %v272_v21 = vpop.f32.mrb[3].mxu1 }
 0x12b   :  { %v250_v22 = vmul.f32 -1.442695, %v207_v20 }
 0x12d   :  { %286 = vpow2.f32 %v250_v22 }
 0x137   :  { %v287_v23 = vpop.eup %286 }
 0x138   :  { %v211_v24 = vadd.f32 1.0, %v287_v23 }
 0x13a   :  { %288 = vrcp.f32 %v211_v24 }
 0x144   :  { %v289_v25 = vpop.eup %288 }
 0x145   :  { %214 = vadd.xlane.f32.xlu0 %v289_v25 }
 0x1d2   :  { %v215_v26 = vpop.xlane.xlu0 %214 }
 0x1d3   :  { %v217_v27 = vmul.f32 0.0078125, %v215_v26 }
 0x1d5   :  { %v218_v28 = vmul.f32 %v217_v27, %v75_v6  ;;  %221 = vst.msk [vmem:[%s527_s6] sm:$0xff] %vm220_vm2, %v217_v27 }
 0x1d7   :  { %219 = vst.msk [vmem:[#allocation10] sm:$0xff] %vm101_vm1, %v218_v28 }
 0x1d8   :  { %389 = shalt.err (!%p386_p8)
}
 0x1d9   :  { %s390_s27 = scalar_lea.hbm %s526_s5, 128 }
 0x1da   :  { %p391_p9 = scmp.ne.s32.totalorder %s526_s5, %s390_s27  ;;  %p394_p10 = scmp.lt.u32.totalorder %s390_s27, %s526_s5 }
 0x1dc   :  { %p396_p11 = pnand %p394_p10, %p391_p9 }
 0x1de   :  { %399 = shalt.err (!%p396_p11)
}
 0x1df   :  { %231 = dma.vmem_to_hbm [thread:$0]  %s229_s21, 128, %s526_s5, [#allocation4]  }
 0x1e0   :  { %406 = dma.done.wait [#allocation4], 128  }
 0x1e1   :  { %407 = vsyncadd [#allocation4], 4294967168 }
 0x1e2   :  { %239 = vsyncpa [#allocation3], 1 }
 0x1e3   :  { %240 = vsyncpa [#allocation6], 1 }
 0x1e4   :  { %241 = vsyncpa [#allocation9], 1 }
 0x1e5   :  { %242 = vsyncpa [#allocation4], 1 }

</bundles_post_ra>
